<compile_context>
chip_gen: v6e
topology: v6e:2x2x1
jax: 0.10.0
libtpu: 0.0.40
codegen_flags: <defaults>
</compile_context>

<pallas_src>
import jax
import jax.numpy as jnp
from jax.experimental import pallas as pl
from jax.experimental.pallas import tpu as pltpu


N_FEATURES = 162
H1 = 30
H2 = 30
OUT = 1

# Batch-tile cap (rows per grid step). f32 x tile at TB=4096 is ~2.65 MB of
# useful bytes (~8 MB of padded VMEM double-buffered); amortizes the ~0.35 us
# per-grid-step overhead while keeping total VMEM well under v7x's limits.
TB_MAX = 4096

# Scoped-VMEM cap: raise v5e's 16 MiB default; still well under v7x's 64 MiB
# physical VMEM (actual usage at TB=4096 is ~<20 MB).
VMEM_LIMIT_BYTES = 48 * 1024 * 1024


def _round_up(n, m):
    return ((n + m - 1) // m) * m


def mlp_kernel(x_ref, w1_ref, b1_ref, w2_ref, b2_ref, w3_ref, b3_ref, o_ref):
    # Cast the streamed x tile to bf16 for the MXU (no-op if producer already
    # emits bf16). Accumulation is f32 throughout.
    x = x_ref[...].astype(jnp.bfloat16)                              # (TB, 162)

    # fc1 + relu: bf16 x bf16 MXU matmul, f32 accumulate.
    h = jnp.dot(x, w1_ref[...], preferred_element_type=jnp.float32)  # (TB, 30)
    h = jnp.maximum(h + b1_ref[...], 0.0)

    # fc2 + relu: cast activations to bf16 so the MXU stays on its native path.
    h = jnp.dot(h.astype(jnp.bfloat16), w2_ref[...],
                preferred_element_type=jnp.float32)                  # (TB, 30)
    h = jnp.maximum(h + b2_ref[...], 0.0)

    # out + sigmoid: single output column -> VPU mul + XLU lane reduce instead
    # of a wasted MXU pass. w3 arrives as a (1, 30) f32 row. Sigmoid's exp
    # lands on the otherwise-idle EUP slot.
    z = jnp.sum(h * w3_ref[...], axis=-1, keepdims=True) + b3_ref[...]  # (TB, 1)
    o_ref[...] = jax.nn.sigmoid(z).astype(o_ref.dtype)
    # TODO(synk): optional lane-dense (1, TB) output layout would avoid the
    # masked (TB, 1) stores; output is ~1% of bytes so skipped for simplicity.


def network_forward(x, params, *, tb_max=TB_MAX):
    """Forward pass of Network. x: (B, 162), f32 or bf16."""
    w1, b1, w2, b2, w3, b3 = params
    B = x.shape[0]

    # Batch tile: multiple of 8 (sublane rule), capped at tb_max.
    assert tb_max % 8 == 0
    TB = min(tb_max, _round_up(max(B, 1), 8))
    grid = (pl.cdiv(B, TB),)  # ragged last block handled by Pallas masking

    # Weights for the two MXU layers: bf16, VMEM-resident (cast is ~20 KB,
    # done once per call / fused away under jit).
    w1_bf = w1.astype(jnp.bfloat16)
    w2_bf = w2.astype(jnp.bfloat16)
    # Final layer weight as a broadcastable (1, H2) f32 row for the VPU path.
    w3_row = w3.reshape(1, H2)

    out = pl.pallas_call(
        mlp_kernel,
        out_shape=jax.ShapeDtypeStruct((B, OUT), jnp.float32),
        grid=grid,
        in_specs=[
            # x: streamed per batch tile (double-buffered by the pipeline),
            # in the producer's dtype -- no extra HBM pass in the wrapper.
            pl.BlockSpec((TB, N_FEATURES), lambda i: (i, 0)),
            # weights / biases: constant index_map -> DMA'd once, VMEM-resident.
            pl.BlockSpec((N_FEATURES, H1), lambda i: (0, 0)),
            pl.BlockSpec((1, H1), lambda i: (0, 0)),
            pl.BlockSpec((H1, H2), lambda i: (0, 0)),
            pl.BlockSpec((1, H2), lambda i: (0, 0)),
            pl.BlockSpec((1, H2), lambda i: (0, 0)),
            pl.BlockSpec((1, OUT), lambda i: (0, 0)),
        ],
        out_specs=pl.BlockSpec((TB, OUT), lambda i: (i, 0)),
        compiler_params=pltpu.CompilerParams(
            # TODO(synk): on v7x, verify in a trace that the batch grid shards
            # across both TensorCores; if not, switch to pltpu.CORE_PARALLEL.
            dimension_semantics=("parallel",),
            vmem_limit_bytes=VMEM_LIMIT_BYTES,
        ),
    )(x, w1_bf, b1, w2_bf, b2, w3_row, b3)

    return out


def init_params(key):
    """Deterministic init mirroring nn.Linear's U(-1/sqrt(fan_in), 1/sqrt(fan_in))."""
    def linear(key, fan_in, fan_out):
        kw, kb = jax.random.split(key)
        bound = 1.0 / jnp.sqrt(float(fan_in))
        # stored as (in, out) so kernel does x @ W
        w = jax.random.uniform(kw, (fan_in, fan_out), jnp.float32, -bound, bound)
        b = jax.random.uniform(kb, (1, fan_out), jnp.float32, -bound, bound)
        return w, b

    k1, k2, k3 = jax.random.split(key, 3)
    w1, b1 = linear(k1, N_FEATURES, H1)
    w2, b2 = linear(k2, H1, H2)
    w3, b3 = linear(k3, H2, OUT)
    return (w1, b1, w2, b2, w3, b3)


def _reference(x, params):
    """Plain-JAX reference mirroring the kernel's bf16-input / f32-accumulate path."""
    w1, b1, w2, b2, w3, b3 = params
    xb = x.astype(jnp.bfloat16)
    h = jnp.dot(xb, w1.astype(jnp.bfloat16), preferred_element_type=jnp.float32)
    h = jnp.maximum(h + b1, 0.0)
    h = jnp.dot(h.astype(jnp.bfloat16), w2.astype(jnp.bfloat16),
                preferred_element_type=jnp.float32)
    h = jnp.maximum(h + b2, 0.0)
    return jax.nn.sigmoid(jnp.dot(h, w3) + b3)


if __name__ == "__main__":
    key = jax.random.PRNGKey(0)
    k_params, k_x1, k_x2 = jax.random.split(key, 3)

    params = init_params(k_params)

    # Small, exact-fit batch (single grid step).
    B1 = 8
    x1 = jax.random.normal(k_x1, (B1, N_FEATURES), jnp.float32)
    out1 = jax.block_until_ready(network_forward(x1, params))
    ref1 = _reference(x1, params)
    assert out1.shape == (B1, OUT)
    assert jnp.allclose(out1, ref1, atol=5e-3, rtol=5e-3), "mismatch vs reference (B=8)"

    # Multi-step grid with a ragged (masked) final block: 300 = 2*128 + 44.
    B2 = 300
    x2 = jax.random.normal(k_x2, (B2, N_FEATURES), jnp.float32)
    out2 = jax.block_until_ready(network_forward(x2, params, tb_max=128))
    ref2 = _reference(x2, params)
    assert out2.shape == (B2, OUT)
    assert jnp.allclose(out2, ref2, atol=5e-3, rtol=5e-3), "mismatch vs reference (B=300)"
    assert bool(jnp.all(jnp.isfinite(out2))), "non-finite values leaked from masked block"

    print("KERNEL_OK")
</pallas_src>

<mosaic_0001>
module attributes {stable_mosaic.version = 11 : i64} {
  func.func @mlp_kernel(%arg0: i32, %arg1: memref<8x162xf32, #tpu.memory_space<vmem>>, %arg2: memref<162x30xbf16, #tpu.memory_space<vmem>>, %arg3: memref<1x30xf32, #tpu.memory_space<vmem>>, %arg4: memref<30x30xbf16, #tpu.memory_space<vmem>>, %arg5: memref<1x30xf32, #tpu.memory_space<vmem>>, %arg6: memref<1x30xf32, #tpu.memory_space<vmem>>, %arg7: memref<1x1xf32, #tpu.memory_space<vmem>>, %arg8: memref<8x1xf32, #tpu.memory_space<vmem>>) attributes {dimension_semantics = [#tpu.dimension_semantics<parallel>], iteration_bounds = array<i64: 1>, scalar_prefetch = 0 : i64, scratch_operands = 0 : i64, tpu.core_type = #tpu.core_type<tc>, window_params = [{transform_indices = @transform_0, window_bounds = array<i64: 8, 162>}, {pipeline_mode = #tpu.pipeline_mode<synchronous>, transform_indices = @transform_1, window_bounds = array<i64: 162, 30>}, {pipeline_mode = #tpu.pipeline_mode<synchronous>, transform_indices = @transform_2, window_bounds = array<i64: 1, 30>}, {pipeline_mode = #tpu.pipeline_mode<synchronous>, transform_indices = @transform_3, window_bounds = array<i64: 30, 30>}, {pipeline_mode = #tpu.pipeline_mode<synchronous>, transform_indices = @transform_4, window_bounds = array<i64: 1, 30>}, {pipeline_mode = #tpu.pipeline_mode<synchronous>, transform_indices = @transform_5, window_bounds = array<i64: 1, 30>}, {pipeline_mode = #tpu.pipeline_mode<synchronous>, transform_indices = @transform_6, window_bounds = array<i64: 1, 1>}, {transform_indices = @transform_7, window_bounds = array<i64: 8, 1>}]} {
    %c0 = arith.constant 0 : index
    %c0_0 = arith.constant 0 : index
    %0 = vector.load %arg1[%c0, %c0_0] : memref<8x162xf32, #tpu.memory_space<vmem>>, vector<8x162xf32>
    %1 = arith.truncf %0 : vector<8x162xf32> to vector<8x162xbf16>
    %c0_1 = arith.constant 0 : index
    %c0_2 = arith.constant 0 : index
    %2 = vector.load %arg2[%c0_1, %c0_2] : memref<162x30xbf16, #tpu.memory_space<vmem>>, vector<162x30xbf16>
    %cst = arith.constant dense<0.000000e+00> : vector<8x30xf32>
    %3 = tpu.matmul %1, %2, %cst {dimension_numbers = #tpu.dot_dimension_numbers<[1], [0], [0], [1], [0, 0, 1, 1], [], []>} : vector<8x162xbf16>, vector<162x30xbf16>, vector<8x30xf32> -> vector<8x30xf32>
    %c0_3 = arith.constant 0 : index
    %c0_4 = arith.constant 0 : index
    %4 = vector.load %arg3[%c0_3, %c0_4] : memref<1x30xf32, #tpu.memory_space<vmem>>, vector<1x30xf32>
    %5 = vector.broadcast %4 : vector<1x30xf32> to vector<8x30xf32>
    %6 = arith.addf %3, %5 : vector<8x30xf32>
    %cst_5 = arith.constant 0.000000e+00 : f32
    %7 = vector.broadcast %cst_5 : f32 to vector<8x30xf32>
    %8 = arith.maximumf %6, %7 : vector<8x30xf32>
    %9 = arith.truncf %8 : vector<8x30xf32> to vector<8x30xbf16>
    %c0_6 = arith.constant 0 : index
    %c0_7 = arith.constant 0 : index
    %10 = vector.load %arg4[%c0_6, %c0_7] : memref<30x30xbf16, #tpu.memory_space<vmem>>, vector<30x30xbf16>
    %cst_8 = arith.constant dense<0.000000e+00> : vector<8x30xf32>
    %11 = tpu.matmul %9, %10, %cst_8 {dimension_numbers = #tpu.dot_dimension_numbers<[1], [0], [0], [1], [0, 0, 1, 1], [], []>} : vector<8x30xbf16>, vector<30x30xbf16>, vector<8x30xf32> -> vector<8x30xf32>
    %c0_9 = arith.constant 0 : index
    %c0_10 = arith.constant 0 : index
    %12 = vector.load %arg5[%c0_9, %c0_10] : memref<1x30xf32, #tpu.memory_space<vmem>>, vector<1x30xf32>
    %13 = vector.broadcast %12 : vector<1x30xf32> to vector<8x30xf32>
    %14 = arith.addf %11, %13 : vector<8x30xf32>
    %cst_11 = arith.constant 0.000000e+00 : f32
    %15 = vector.broadcast %cst_11 : f32 to vector<8x30xf32>
    %16 = arith.maximumf %14, %15 : vector<8x30xf32>
    %c0_12 = arith.constant 0 : index
    %c0_13 = arith.constant 0 : index
    %17 = vector.load %arg6[%c0_12, %c0_13] : memref<1x30xf32, #tpu.memory_space<vmem>>, vector<1x30xf32>
    %18 = vector.broadcast %17 : vector<1x30xf32> to vector<8x30xf32>
    %19 = arith.mulf %16, %18 : vector<8x30xf32>
    %cst_14 = arith.constant dense<0.000000e+00> : vector<8xf32>
    %20 = vector.multi_reduction <add>, %19, %cst_14 [1] : vector<8x30xf32> to vector<8xf32>
    %21 = vector.shape_cast %20 : vector<8xf32> to vector<8x1xf32>
    %c0_15 = arith.constant 0 : index
    %c0_16 = arith.constant 0 : index
    %22 = vector.load %arg7[%c0_15, %c0_16] : memref<1x1xf32, #tpu.memory_space<vmem>>, vector<1x1xf32>
    %23 = vector.broadcast %22 : vector<1x1xf32> to vector<8x1xf32>
    %24 = arith.addf %21, %23 : vector<8x1xf32>
    %25 = arith.negf %24 : vector<8x1xf32>
    %26 = math.exp %25 : vector<8x1xf32>
    %cst_17 = arith.constant 1.000000e+00 : f32
    %27 = vector.broadcast %cst_17 : f32 to vector<8x1xf32>
    %28 = arith.addf %27, %26 : vector<8x1xf32>
    %29 = arith.divf %27, %28 : vector<8x1xf32>
    %c0_18 = arith.constant 0 : index
    %c0_19 = arith.constant 0 : index
    %30 = vector.load %arg8[%c0_18, %c0_19] : memref<8x1xf32, #tpu.memory_space<vmem>>, vector<8x1xf32>
    tpu.vector_store %arg8[%c0_18, %c0_19], %29 {strides = array<i32>} : memref<8x1xf32, #tpu.memory_space<vmem>>, vector<8x1xf32>,
    return
  }
  func.func @transform_0(%arg0: i32) -> (i32, i32) {
    %c0_i32 = arith.constant 0 : i32
    %c0_i32_0 = arith.constant 0 : i32
    return %arg0, %c0_i32 : i32, i32
  }
  func.func @transform_1(%arg0: i32) -> (i32, i32) {
    %c0_i32 = arith.constant 0 : i32
    %c0_i32_0 = arith.constant 0 : i32
    %c0_i32_1 = arith.constant 0 : i32
    return %c0_i32, %c0_i32_0 : i32, i32
  }
  func.func @transform_2(%arg0: i32) -> (i32, i32) {
    %c0_i32 = arith.constant 0 : i32
    %c0_i32_0 = arith.constant 0 : i32
    %c0_i32_1 = arith.constant 0 : i32
    return %c0_i32, %c0_i32_0 : i32, i32
  }
  func.func @transform_3(%arg0: i32) -> (i32, i32) {
    %c0_i32 = arith.constant 0 : i32
    %c0_i32_0 = arith.constant 0 : i32
    %c0_i32_1 = arith.constant 0 : i32
    return %c0_i32, %c0_i32_0 : i32, i32
  }
  func.func @transform_4(%arg0: i32) -> (i32, i32) {
    %c0_i32 = arith.constant 0 : i32
    %c0_i32_0 = arith.constant 0 : i32
    %c0_i32_1 = arith.constant 0 : i32
    return %c0_i32, %c0_i32_0 : i32, i32
  }
  func.func @transform_5(%arg0: i32) -> (i32, i32) {
    %c0_i32 = arith.constant 0 : i32
    %c0_i32_0 = arith.constant 0 : i32
    %c0_i32_1 = arith.constant 0 : i32
    return %c0_i32, %c0_i32_0 : i32, i32
  }
  func.func @transform_6(%arg0: i32) -> (i32, i32) {
    %c0_i32 = arith.constant 0 : i32
    %c0_i32_0 = arith.constant 0 : i32
    %c0_i32_1 = arith.constant 0 : i32
    return %c0_i32, %c0_i32_0 : i32, i32
  }
  func.func @transform_7(%arg0: i32) -> (i32, i32) {
    %c0_i32 = arith.constant 0 : i32
    %c0_i32_0 = arith.constant 0 : i32
    return %arg0, %c0_i32 : i32, i32
  }
}

</mosaic_0001>

<bundles_post_ra>
// kernel: tpu_custom_call.1
= control target key start
LH: loop header
LB: loop body
LE: loop exit
PB: predicated region body
PF: predicated region fallthrough
CT: control target
= control target key end

     0   :  { %v327_v0 = vmov 0   ;;  %v328_v2 = vmov 0.0   ;;  %vm124_vm0 = vcmask 277504   ;;  %vm128_vm1 = vcmask 1040384   ;;  %s432_s1 = inlined_call_operand.vmem [shape: bf16[162,30], index: 1, kind: input, shape index: {}]   ;;  %s433_s0 = inlined_call_operand.vmem [shape: f32[8,162], index: 0, kind: input, shape index: {}]   ;;  %s434_s3 = inlined_call_operand.vmem [shape: bf16[30,30], index: 3, kind: input, shape index: {}]   ;;  %s435_s2 = inlined_call_operand.vmem [shape: f32[1,30], index: 2, kind: input, shape index: {}]   ;;  %s436_s6 = inlined_call_operand.<no memory space> [shape: f32[1,1], index: 6, kind: input, shape index: {}]   ;;  %s437_s4 = inlined_call_operand.vmem [shape: f32[1,30], index: 4, kind: input, shape index: {}]   ;;  %s438_s5 = inlined_call_operand.vmem [shape: f32[1,30], index: 5, kind: input, shape index: {}]   ;;  %s439_s7 = inlined_call_operand.vmem [shape: f32[8,1], index: 7, kind: output, shape index: {}]  }
   0x1   :  { %132 = vmatprep.subr.bf16.mxu0 %v327_v0  ;;  %v310_v1 = vld [vmem:[%s432_s1 + $0x38] sm:$0xff]   ;;  %299 = vmatprep.subr.bf16.mxu1 %v328_v2  ;;  %v311_v3 = vld [vmem:[%s432_s1 + $0x30] sm:$0xff]   ;;  %v312_v4 = vld [vmem:[%s432_s1 + $0x28] sm:$0xff]   ;;  %vm200_vm2 = vcmask 1046528   ;;  %vm329_vm3 = vmmov 0   ;;  %vm196_vm4 = vcmask 244736   ;;  %v12_v29 = vstv %s436_s6 }
   0x2   :  { %133 = vmatpush1.bf16.msra.mxu0 %v310_v1  ;;  %v313_v5 = vld [vmem:[%s432_s1 + $0x20] sm:$0xff]   ;;  %v30_v6 = vld [vmem:[%s433_s0 + $0x8] sm:$0xff]  ;;  %v314_v8 = vld [vmem:[%s432_s1 + $0x18] sm:$0xff]   ;;  %303 = vmatprep.mubr.msk.bf16.mxu1 %vm329_vm3, %v328_v2  ;;  %13 = vst [vmem:[#allocation2] sm:$0x1] %v12_v29  ;;  %vm270_vm5 = vcmask 7168  }
   0x3   :  { %134 = vmatprep.subr.bf16.mxu0 %v327_v0  ;;  %v32_v7 = vpack.c.bf16 %v30_v6, %v30_v6  ;;  %v315_v9 = vld [vmem:[%s432_s1 + $0x10] sm:$0xff]   ;;  %v316_v10 = vld [vmem:[%s432_s1 + $0x8] sm:$0xff]   ;;  %v317_v11 = vld [vmem:[%s432_s1] sm:$0xff]  }
   0x4   :  { %v318_v12 = vld [vmem:[%s432_s1 + $0x50] ss:$0 sps:$4 sm:$0x11]   ;;  %v319_v14 = vld [vmem:[%s432_s1 + $0x48] sm:$0xff]   ;;  %v320_v15 = vld [vmem:[%s432_s1 + $0x40] sm:$0xff]  }
   0x5   :  { %288 = vmatprep.mubr.msk.bf16.mxu0 %vm124_vm0, %v32_v7  ;;  %v130_v13 = vsel %vm128_vm1, %v318_v12, 0  ;;  %v29_v16 = vld [vmem:[%s433_s0] sm:$0xff]  ;;  %v321_v18 = vld [vmem:[%s434_s3 + $0x8] sm:$0x7f]  }
   0x6   :  { %135 = vmatpush1.bf16.msra.mxu0 %v311_v3  ;;  %v31_v17 = vpack.c.bf16 %v29_v16, %v29_v16  ;;  %v202_v19 = vsel %vm200_vm2, %v321_v18, 0  ;;  %v322_v20 = vld [vmem:[%s434_s3] sm:$0xff]  }
   0x7   :  { %136 = vmatprep.subr.bf16.mxu0 %v327_v0  ;;  %300 = vmatpush3.bf16.msra.mxu1 %v202_v19  ;;  %v276_v21 = vld [vmem:[%s435_s2] ss:$0 sm:$0xff] }
   0x8   :  { %301 = vmatprep.subr.bf16.mxu1 %v328_v2  ;;  %v289_v30 = vld [vmem:[%s437_s4] ss:$0 sm:$0xff] }
   0x9   :  { %v293_v34 = vld [vmem:[%s438_s5] ss:$0 sm:$0xff] }
   0xa   :  { %137 = vmatpush1.bf16.msra.mxu0 %v312_v4  ;;  %v294_v40 = vld [vmem:[#allocation2] ss:$0 sm:$0xff] }
   0xb   :  { %138 = vmatprep.subr.bf16.mxu0 %v327_v0  ;;  %302 = vmatpush3.bf16.msra.mxu1 %v322_v20 }
   0xe   :  { %139 = vmatpush1.bf16.msra.mxu0 %v313_v5 }
   0xf   :  { %140 = vmatprep.subr.bf16.mxu0 %v327_v0 }
  0x12   :  { %141 = vmatpush1.bf16.msra.mxu0 %v314_v8 }
  0x13   :  { %142 = vmatprep.subr.bf16.mxu0 %v327_v0 }
  0x16   :  { %143 = vmatpush1.bf16.msra.mxu0 %v315_v9 }
  0x17   :  { %144 = vmatprep.subr.bf16.mxu0 %v327_v0 }
  0x1a   :  { %145 = vmatpush1.bf16.msra.mxu0 %v316_v10 }
  0x1b   :  { %146 = vmatprep.subr.bf16.mxu0 %v327_v0 }
  0x1e   :  { %147 = vmatpush1.bf16.msra.mxu0 %v317_v11 }
  0x1f   :  { %158 = vmatprep.subr.bf16.mxu0 %v327_v0 }
  0x22   :  { %159 = vmatpush2.bf16.msra.mxu0 %v130_v13 }
  0x23   :  { %160 = vmatprep.subr.bf16.mxu0 %v327_v0 }
  0x26   :  { %161 = vmatpush2.bf16.msra.mxu0 %v319_v14 }
  0x27   :  { %162 = vmatprep.subr.bf16.mxu0 %v327_v0 }
  0x2a   :  { %163 = vmatpush2.bf16.msra.mxu0 %v320_v15 }
  0x2d   :  { %165 = vmatmul.mubr.bf16.vlgmr.msra.gmra.mxu0 %v31_v17 }
  0xed   :  { %v166_v22 = vpop.f32.mrf.mxu0 }
  0xee   :  { %v167_v23 = vadd.f32 %v276_v21, %v166_v22 }
  0xef   :  { %v168_v24 = vpop.f32.mrf.mxu0 }
  0xf0   :  { %v172_v25 = vmax.f32 %v167_v23, 0.0 }
  0xf1   :  { %v169_v26 = vpop.f32.mrf.mxu0 }
  0xf2   :  { %v173_v27 = vpack.c.bf16 %v172_v25, %v172_v25 }
  0xf3   :  { %v170_v28 = vpop.f32.mrf.mxu0 }
  0xf4   :  { %304 = vmatmul.mubr.msk.bf16.vlgmr.msra.gmra.mxu1 %vm196_vm4, %v173_v27 }
 0x1b4   :  { %v238_v31 = vpop.f32.mrf.mxu1 }
 0x1b5   :  { %v239_v32 = vadd.f32 %v289_v30, %v238_v31 }
 0x1b6   :  { %v305_v33 = vpop.f32.mrf.mxu1 }
 0x1b7   :  { %v244_v35 = vmax.f32 %v239_v32, 0.0 }
 0x1b8   :  { %v241_v36 = vpop.f32.mrf.mxu1 }
 0x1b9   :  { %v252_v37 = vmul.f32 %v293_v34, %v244_v35 }
 0x1ba   :  { %v306_v38 = vpop.f32.mrf.mxu1 }
 0x1bb   :  { %v253_v39 = vsel %vm196_vm4, %v252_v37, 0.0 }
 0x1bc   :  { %254 = vadd.xlane.f32.xlu0 %v253_v39 }
 0x245   :  { %v255_v41 = vpop.xlane.xlu0 %254 }
 0x246   :  { %v263_v42 = vadd.f32 %v294_v40, %v255_v41 }
 0x248   :  { %v295_v43 = vmul.f32 -1.442695, %v263_v42 }
 0x24a   :  { %323 = vpow2.f32 %v295_v43 }
 0x257   :  { %v324_v44 = vpop.eup %323 }
 0x258   :  { %v267_v45 = vadd.f32 1.0, %v324_v44 }
 0x25a   :  { %325 = vrcp.f32 %v267_v45 }
 0x267   :  { %v326_v46 = vpop.eup %325 }
 0x268   :  { %271 = vst.msk [vmem:[%s439_s7] sm:$0xff] %vm270_vm5, %v326_v46 }

</bundles_post_ra>
